<compile_context>
chip_gen: v6e
topology: v6e:2x2x1
jax: 0.10.0
libtpu: 0.0.40
codegen_flags: <defaults>
</compile_context>

<pallas_src>
import numpy as np

import jax
import jax.numpy as jnp
from jax import lax
from jax.experimental import pallas as pl
from jax.experimental.pallas import tpu as pltpu

EPS = 1e-5

# Set True on v6e/v7x at realistic (MXU-bound) sizes to feed the conv matmuls in bf16 with
# f32 accumulation.  Off by default: the resulting ~1e-2 relative error exceeds this
# script's 1e-3 correctness tolerance, and this toy instance is overhead-bound, not
# MXU-bound, so the flag measures nothing here.
USE_BF16_MXU = False


def _mxu_dot(a, b):
    if USE_BF16_MXU:
        a = a.astype(jnp.bfloat16)
        b = b.astype(jnp.bfloat16)
    return jnp.dot(a, b, preferred_element_type=jnp.float32)


def _make_resblock_kernel(n, h, w, c):
    """Build the fused ResBlock kernel for static shapes (N, H, W, C)."""
    nh, wc = n * h, w * c
    inv_m = 1.0 / (n * h * w)

    def kernel(x_ref, cw_ref, gb_ref, o_ref):
        # Per-launch constants (VPU iota/compare only, no HBM traffic).
        # TODO(synk): once N*H is tiled over a >1 grid, hoist these behind
        #             @pl.when(program_id == 0) into VMEM scratch instead of rebuilding.
        row = lax.broadcasted_iota(jnp.int32, (nh, wc), 0) % h
        top = row == 0           # first row of each image  -> zero padding above
        bot = row == h - 1       # last row of each image   -> zero padding below
        src_c = lax.broadcasted_iota(jnp.int32, (wc, wc), 0) % c
        dst_c = lax.broadcasted_iota(jnp.int32, (wc, wc), 1) % c
        pool = (src_c == dst_c).astype(jnp.float32)   # channel pool + re-broadcast matrix

        def conv3x3(src, cw):
            """3x3 same-padded conv of src (N*H, W*C) as ONE (NH,3WC)@(3WC,WC) matmul.

            The kh row shifts commute with the width/channel contraction, so they are
            applied to the input via pltpu.roll (XLU) plus top/bot masks, and the three
            kh taps are stacked along K.
            """
            dn = jnp.where(top, 0.0, pltpu.roll(src, 1, axis=0))       # row r <- src[r-1]
            up = jnp.where(bot, 0.0, pltpu.roll(src, nh - 1, axis=0))  # row r <- src[r+1]
            x3 = jnp.concatenate([dn, src, up], axis=1)                # lane-dense concat
            return _mxu_dot(x3, cw)

        def bn_affine(y, gamma, beta):
            """Training-mode BatchNorm (biased variance), one-pass sum / sum-of-squares.

            Row-sums first (sublane reduce), then one tiny (1,WC)@(WC,WC) pool matmul per
            statistic to pool over W and re-broadcast across the (w, c) lane layout.
            """
            s1 = jnp.sum(y, axis=0, keepdims=True)            # (1, WC)
            s2 = jnp.sum(y * y, axis=0, keepdims=True)        # (1, WC)
            mean = jnp.dot(s1, pool, preferred_element_type=jnp.float32) * inv_m
            ex2 = jnp.dot(s2, pool, preferred_element_type=jnp.float32) * inv_m
            # TODO(synk): one-pass E[y^2]-E[y]^2 can cancel catastrophically at real
            #             activation scales; use a centered second pass if that bites.
            scale = gamma * lax.rsqrt(ex2 - mean * mean + EPS)
            return y * scale + (beta - mean * scale)

        x = x_ref[...]                                   # whole block stays in VMEM/vregs
        a1 = jnp.maximum(
            bn_affine(conv3x3(x, cw_ref[0]), gb_ref[0:1, :], gb_ref[1:2, :]), 0.0)
        y2 = bn_affine(conv3x3(a1, cw_ref[1]), gb_ref[2:3, :], gb_ref[3:4, :])
        o_ref[...] = jnp.maximum(y2 + x, 0.0)            # residual + ReLU, lane-dense store

    return kernel


def _banded_conv_operands(w_hwio, w_spatial):
    """(3,3,Cin,Cout) HWIO weight -> (3*W*Cin, W*Cout) fused block-tridiagonal operand.

    B[kh][ws*Cin+ci, wd*Cout+co] = w[kh, ws-wd+1, ci, co] when |ws-wd| <= 1 (else 0), so
    (X @ B[kh]) contracts the kw and ci axes of the conv; the width zero-padding falls out
    of the band structure.  The three kh blocks are stacked along K so each conv stage is
    a single matmul in the kernel.
    """
    _, _, cin, cout = w_hwio.shape
    sel = np.zeros((3, w_spatial, w_spatial), np.float32)
    for kw in range(3):
        for wd in range(w_spatial):
            ws = wd + kw - 1
            if 0 <= ws < w_spatial:
                sel[kw, ws, wd] = 1.0
    b = jnp.einsum("kst,hkio->hsito", jnp.asarray(sel), w_hwio)
    return b.reshape(3 * w_spatial * cin, w_spatial * cout)


def prepare_resblock_params(params, w_spatial):
    """Once-per-model (inference) / once-per-step (training) parameter transform.

    Kept OUT of the per-forward path: the dense banded operands inflate weight bytes ~80x
    vs the raw 3x3 filters, so they must not be rebuilt on every call.
    """
    # TODO(synk): at real ResNet sizes (e.g. W=56, C=64) the dense banded operand is
    #             O((W*C)^2) and exceeds v7x's 64 MiB VMEM; store only the nonzero
    #             3C-wide band (or build it in-kernel from the raw (3,3,C,C) weight) and
    #             tile N*H over a "parallel" grid axis with two-phase BatchNorm.
    w1, g1, b1, w2, g2, b2 = params          # conv weights in HWIO (3, 3, Cin, Cout)
    c_out = w1.shape[3]
    cw = jnp.stack([_banded_conv_operands(w1, w_spatial),
                    _banded_conv_operands(w2, w_spatial)])             # (2, 3*W*C, W*C)
    lane_tile = lambda v: jnp.tile(v.reshape(1, c_out), (1, w_spatial))  # (C,) -> (1, W*C)
    gb = jnp.concatenate([lane_tile(g1), lane_tile(b1),
                          lane_tile(g2), lane_tile(b2)], axis=0)        # (4, W*C)
    return cw, gb


def resblock_forward(x_nhwc, prepared):
    """Fused ResBlock forward.  x_nhwc: (N, H, W, C) float32 NHWC.  Returns NHWC output."""
    # TODO(synk): downsample=None / stride=1 / Cin==Cout configuration only; a non-None
    #             downsample (1x1 conv + BN on the identity) and stride > 1 are not
    #             implemented.
    cw, gb = prepared
    n, h, w, c = x_nhwc.shape
    nh, wc = n * h, w * c
    assert cw.shape == (2, 3 * wc, wc) and gb.shape == (4, wc)

    # NHWC -> (N*H, W*C) slab is a free reshape (no transpose pass); the caller owns layout.
    x2 = x_nhwc.reshape(nh, wc)

    kernel = _make_resblock_kernel(n, h, w, c)
    out2 = pl.pallas_call(
        kernel,
        out_shape=jax.ShapeDtypeStruct((nh, wc), jnp.float32),
        grid_spec=pl.GridSpec(
            grid=(1,),
            in_specs=[
                pl.BlockSpec((nh, wc), lambda i: (0, 0)),            # x (N*H, W*C)
                pl.BlockSpec((2, 3 * wc, wc), lambda i: (0, 0, 0)),  # conv1+conv2 operands
                pl.BlockSpec((4, wc), lambda i: (0, 0)),             # bn1/bn2 gamma, beta
            ],
            out_specs=pl.BlockSpec((nh, wc), lambda i: (0, 0)),
        ),
        # Same shape/dtype, single-step grid: reuse the input HBM buffer for the output.
        input_output_aliases={0: 0},
        compiler_params=pltpu.CompilerParams(dimension_semantics=("arbitrary",)),
    )(x2, cw, gb)

    return out2.reshape(n, h, w, c)


# ---------------------------------------------------------------------------
# Pure-JAX reference (correctness check only).
# ---------------------------------------------------------------------------
def _bn_train_ref(y, gamma, beta):
    mean = jnp.mean(y, axis=(0, 1, 2), keepdims=True)
    var = jnp.mean(jnp.square(y - mean), axis=(0, 1, 2), keepdims=True)
    return (y - mean) * lax.rsqrt(var + EPS) * gamma + beta


def resblock_reference(x_nchw, params):
    w1, g1, b1, w2, g2, b2 = params
    x = jnp.transpose(x_nchw, (0, 2, 3, 1))
    dn = ("NHWC", "HWIO", "NHWC")
    y = lax.conv_general_dilated(x, w1, (1, 1), ((1, 1), (1, 1)), dimension_numbers=dn)
    y = jnp.maximum(_bn_train_ref(y, g1, b1), 0.0)
    y = lax.conv_general_dilated(y, w2, (1, 1), ((1, 1), (1, 1)), dimension_numbers=dn)
    y = jnp.maximum(_bn_train_ref(y, g2, b2) + x, 0.0)
    return jnp.transpose(y, (0, 3, 1, 2))


if __name__ == "__main__":
    key = jax.random.PRNGKey(0)
    kx, kw1, kw2, kg1, kb1, kg2, kb2 = jax.random.split(key, 7)

    N, C, H, W = 2, 8, 16, 16        # input_size = output_size = 8, stride=1, downsample=None
    x_nchw = jax.random.normal(kx, (N, C, H, W), jnp.float32)

    w1 = jax.random.normal(kw1, (3, 3, C, C), jnp.float32) * 0.1   # conv1 weight (HWIO)
    w2 = jax.random.normal(kw2, (3, 3, C, C), jnp.float32) * 0.1   # conv2 weight (HWIO)
    g1 = jax.random.uniform(kg1, (C,), jnp.float32, 0.5, 1.5)      # bn1 weight
    b1 = jax.random.normal(kb1, (C,), jnp.float32) * 0.1           # bn1 bias
    g2 = jax.random.uniform(kg2, (C,), jnp.float32, 0.5, 1.5)      # bn2 weight
    b2 = jax.random.normal(kb2, (C,), jnp.float32) * 0.1           # bn2 bias
    params = (w1, g1, b1, w2, g2, b2)

    # One-time parameter prep (out of the per-forward path) and caller-owned NHWC layout.
    prepared = prepare_resblock_params(params, W)
    x_nhwc = jnp.transpose(x_nchw, (0, 2, 3, 1))   # done once by the caller, not per call

    fwd = jax.jit(resblock_forward)
    out_nhwc = jax.block_until_ready(fwd(x_nhwc, prepared))

    ref = resblock_reference(x_nchw, params)
    out = jnp.transpose(out_nhwc, (0, 3, 1, 2))    # back to NCHW for the comparison only
    assert out.shape == (N, C, H, W), out.shape
    max_err = float(jnp.max(jnp.abs(out - ref)))
    assert jnp.allclose(out, ref, rtol=1e-3, atol=1e-3), max_err

    print("KERNEL_OK")
</pallas_src>

<mosaic_0001>
module attributes {stable_mosaic.version = 11 : i64} {
  func.func @kernel(%arg0: i32, %arg1: memref<32x128xf32, #tpu.memory_space<vmem>>, %arg2: memref<2x384x128xf32, #tpu.memory_space<vmem>>, %arg3: memref<4x128xf32, #tpu.memory_space<vmem>>, %arg4: memref<32x128xf32, #tpu.memory_space<vmem>>) attributes {dimension_semantics = [#tpu.dimension_semantics<arbitrary>], iteration_bounds = array<i64: 1>, scalar_prefetch = 0 : i64, scratch_operands = 0 : i64, tpu.core_type = #tpu.core_type<tc>, window_params = [{pipeline_mode = #tpu.pipeline_mode<synchronous>, transform_indices = @transform_0, window_bounds = array<i64: 32, 128>}, {pipeline_mode = #tpu.pipeline_mode<synchronous>, transform_indices = @transform_1, window_bounds = array<i64: 2, 384, 128>}, {pipeline_mode = #tpu.pipeline_mode<synchronous>, transform_indices = @transform_2, window_bounds = array<i64: 4, 128>}, {pipeline_mode = #tpu.pipeline_mode<synchronous>, transform_indices = @transform_3, window_bounds = array<i64: 32, 128>}]} {
    %0 = tpu.iota {dimensions = array<i32: 0>} : vector<32x128xi32>
    %c16_i32 = arith.constant 16 : i32
    %c0_i32 = arith.constant 0 : i32
    %1 = arith.cmpi eq, %c16_i32, %c0_i32 : i32
    %c1_i32 = arith.constant 1 : i32
    %2 = arith.select %1, %c1_i32, %c16_i32 : i32
    %3 = vector.broadcast %2 : i32 to vector<32x128xi32>
    %4 = arith.remsi %0, %3 : vector<32x128xi32>
    %c0_i32_0 = arith.constant 0 : i32
    %5 = vector.broadcast %c0_i32_0 : i32 to vector<32x128xi32>
    %6 = arith.cmpi ne, %4, %5 : vector<32x128xi32>
    %c0_i32_1 = arith.constant 0 : i32
    %7 = vector.broadcast %c0_i32_1 : i32 to vector<32x128xi32>
    %8 = arith.cmpi slt, %4, %7 : vector<32x128xi32>
    %c0_i32_2 = arith.constant 0 : i32
    %9 = arith.cmpi slt, %2, %c0_i32_2 : i32
    %10 = vector.broadcast %9 : i1 to vector<32x128xi1>
    %11 = vector.broadcast %10 : vector<32x128xi1> to vector<32x128xi1>
    %12 = arith.xori %8, %11 : vector<32x128xi1>
    %13 = arith.andi %12, %6 : vector<32x128xi1>
    %14 = vector.broadcast %2 : i32 to vector<32x128xi32>
    %15 = arith.addi %4, %14 : vector<32x128xi32>
    %16 = arith.select %13, %15, %4 : vector<32x128xi1>, vector<32x128xi32>
    %c0_i32_3 = arith.constant 0 : i32
    %17 = vector.broadcast %c0_i32_3 : i32 to vector<32x128xi32>
    %18 = arith.cmpi eq, %16, %17 : vector<32x128xi32>
    %c15_i32 = arith.constant 15 : i32
    %19 = vector.broadcast %c15_i32 : i32 to vector<32x128xi32>
    %20 = arith.cmpi eq, %16, %19 : vector<32x128xi32>
    %21 = tpu.iota {dimensions = array<i32: 0>} : vector<128x128xi32>
    %c8_i32 = arith.constant 8 : i32
    %c0_i32_4 = arith.constant 0 : i32
    %22 = arith.cmpi eq, %c8_i32, %c0_i32_4 : i32
    %c1_i32_5 = arith.constant 1 : i32
    %23 = arith.select %22, %c1_i32_5, %c8_i32 : i32
    %24 = vector.broadcast %23 : i32 to vector<128x128xi32>
    %25 = arith.remsi %21, %24 : vector<128x128xi32>
    %c0_i32_6 = arith.constant 0 : i32
    %26 = vector.broadcast %c0_i32_6 : i32 to vector<128x128xi32>
    %27 = arith.cmpi ne, %25, %26 : vector<128x128xi32>
    %c0_i32_7 = arith.constant 0 : i32
    %28 = vector.broadcast %c0_i32_7 : i32 to vector<128x128xi32>
    %29 = arith.cmpi slt, %25, %28 : vector<128x128xi32>
    %c0_i32_8 = arith.constant 0 : i32
    %30 = arith.cmpi slt, %23, %c0_i32_8 : i32
    %31 = vector.broadcast %30 : i1 to vector<128x128xi1>
    %32 = vector.broadcast %31 : vector<128x128xi1> to vector<128x128xi1>
    %33 = arith.xori %29, %32 : vector<128x128xi1>
    %34 = arith.andi %33, %27 : vector<128x128xi1>
    %35 = vector.broadcast %23 : i32 to vector<128x128xi32>
    %36 = arith.addi %25, %35 : vector<128x128xi32>
    %37 = arith.select %34, %36, %25 : vector<128x128xi1>, vector<128x128xi32>
    %38 = tpu.iota {dimensions = array<i32: 1>} : vector<128x128xi32>
    %c8_i32_9 = arith.constant 8 : i32
    %c0_i32_10 = arith.constant 0 : i32
    %39 = arith.cmpi eq, %c8_i32_9, %c0_i32_10 : i32
    %c1_i32_11 = arith.constant 1 : i32
    %40 = arith.select %39, %c1_i32_11, %c8_i32_9 : i32
    %41 = vector.broadcast %40 : i32 to vector<128x128xi32>
    %42 = arith.remsi %38, %41 : vector<128x128xi32>
    %c0_i32_12 = arith.constant 0 : i32
    %43 = vector.broadcast %c0_i32_12 : i32 to vector<128x128xi32>
    %44 = arith.cmpi ne, %42, %43 : vector<128x128xi32>
    %c0_i32_13 = arith.constant 0 : i32
    %45 = vector.broadcast %c0_i32_13 : i32 to vector<128x128xi32>
    %46 = arith.cmpi slt, %42, %45 : vector<128x128xi32>
    %c0_i32_14 = arith.constant 0 : i32
    %47 = arith.cmpi slt, %40, %c0_i32_14 : i32
    %48 = vector.broadcast %47 : i1 to vector<128x128xi1>
    %49 = vector.broadcast %48 : vector<128x128xi1> to vector<128x128xi1>
    %50 = arith.xori %46, %49 : vector<128x128xi1>
    %51 = arith.andi %50, %44 : vector<128x128xi1>
    %52 = vector.broadcast %40 : i32 to vector<128x128xi32>
    %53 = arith.addi %42, %52 : vector<128x128xi32>
    %54 = arith.select %51, %53, %42 : vector<128x128xi1>, vector<128x128xi32>
    %55 = arith.cmpi eq, %37, %54 : vector<128x128xi32>
    %56 = arith.extui %55 : vector<128x128xi1> to vector<128x128xi32>
    %57 = arith.sitofp %56 : vector<128x128xi32> to vector<128x128xf32>
    %c0 = arith.constant 0 : index
    %c0_15 = arith.constant 0 : index
    %58 = vector.load %arg1[%c0, %c0_15] : memref<32x128xf32, #tpu.memory_space<vmem>>, vector<32x128xf32>
    %c0_16 = arith.constant 0 : index
    %c0_17 = arith.constant 0 : index
    %c0_18 = arith.constant 0 : index
    %59 = vector.load %arg2[%c0_16, %c0_17, %c0_18] : memref<2x384x128xf32, #tpu.memory_space<vmem>>, vector<1x384x128xf32>
    %60 = vector.shape_cast %59 : vector<1x384x128xf32> to vector<384x128xf32>
    %c1_i32_19 = arith.constant 1 : i32
    %61 = tpu.dynamic_rotate %58 by %c1_i32_19 dim 0 : vector<32x128xf32>, i32 -> vector<32x128xf32>
    %cst = arith.constant 0.000000e+00 : f32
    %62 = vector.broadcast %cst : f32 to vector<32x128xf32>
    %63 = arith.select %18, %62, %61 : vector<32x128xi1>, vector<32x128xf32>
    %c31_i32 = arith.constant 31 : i32
    %64 = tpu.dynamic_rotate %58 by %c31_i32 dim 0 : vector<32x128xf32>, i32 -> vector<32x128xf32>
    %cst_20 = arith.constant 0.000000e+00 : f32
    %65 = vector.broadcast %cst_20 : f32 to vector<32x128xf32>
    %66 = arith.select %20, %65, %64 : vector<32x128xi1>, vector<32x128xf32>
    %67 = tpu.concatenate %63, %58, %66 in 1 : vector<32x128xf32>, vector<32x128xf32>, vector<32x128xf32> -> vector<32x384xf32>
    %cst_21 = arith.constant dense<0.000000e+00> : vector<32x128xf32>
    %68 = tpu.matmul %67, %60, %cst_21 {dimension_numbers = #tpu.dot_dimension_numbers<[1], [0], [0], [1], [0, 0, 1, 1], [], []>} : vector<32x384xf32>, vector<384x128xf32>, vector<32x128xf32> -> vector<32x128xf32>
    %c0_22 = arith.constant 0 : index
    %c0_23 = arith.constant 0 : index
    %69 = vector.load %arg3[%c0_22, %c0_23] : memref<4x128xf32, #tpu.memory_space<vmem>>, vector<1x128xf32>
    %c1 = arith.constant 1 : index
    %c0_24 = arith.constant 0 : index
    %70 = vector.load %arg3[%c1, %c0_24] : memref<4x128xf32, #tpu.memory_space<vmem>>, vector<1x128xf32>
    %cst_25 = arith.constant dense<0.000000e+00> : vector<128xf32>
    %71 = vector.multi_reduction <add>, %68, %cst_25 [0] : vector<32x128xf32> to vector<128xf32>
    %72 = vector.shape_cast %71 : vector<128xf32> to vector<1x128xf32>
    %73 = arith.mulf %68, %68 : vector<32x128xf32>
    %cst_26 = arith.constant dense<0.000000e+00> : vector<128xf32>
    %74 = vector.multi_reduction <add>, %73, %cst_26 [0] : vector<32x128xf32> to vector<128xf32>
    %75 = vector.shape_cast %74 : vector<128xf32> to vector<1x128xf32>
    %cst_27 = arith.constant dense<0.000000e+00> : vector<1x128xf32>
    %76 = tpu.matmul %72, %57, %cst_27 {dimension_numbers = #tpu.dot_dimension_numbers<[1], [0], [0], [1], [0, 0, 1, 1], [], []>} : vector<1x128xf32>, vector<128x128xf32>, vector<1x128xf32> -> vector<1x128xf32>
    %cst_28 = arith.constant 0.001953125 : f32
    %77 = vector.broadcast %cst_28 : f32 to vector<1x128xf32>
    %78 = arith.mulf %76, %77 : vector<1x128xf32>
    %cst_29 = arith.constant dense<0.000000e+00> : vector<1x128xf32>
    %79 = tpu.matmul %75, %57, %cst_29 {dimension_numbers = #tpu.dot_dimension_numbers<[1], [0], [0], [1], [0, 0, 1, 1], [], []>} : vector<1x128xf32>, vector<128x128xf32>, vector<1x128xf32> -> vector<1x128xf32>
    %cst_30 = arith.constant 0.001953125 : f32
    %80 = vector.broadcast %cst_30 : f32 to vector<1x128xf32>
    %81 = arith.mulf %79, %80 : vector<1x128xf32>
    %82 = arith.mulf %78, %78 : vector<1x128xf32>
    %83 = arith.subf %81, %82 : vector<1x128xf32>
    %cst_31 = arith.constant 9.99999974E-6 : f32
    %84 = vector.broadcast %cst_31 : f32 to vector<1x128xf32>
    %85 = arith.addf %83, %84 : vector<1x128xf32>
    %86 = math.rsqrt %85 : vector<1x128xf32>
    %87 = arith.mulf %69, %86 : vector<1x128xf32>
    %88 = vector.broadcast %87 : vector<1x128xf32> to vector<32x128xf32>
    %89 = arith.mulf %68, %88 : vector<32x128xf32>
    %90 = arith.mulf %78, %87 : vector<1x128xf32>
    %91 = arith.subf %70, %90 : vector<1x128xf32>
    %92 = vector.broadcast %91 : vector<1x128xf32> to vector<32x128xf32>
    %93 = arith.addf %89, %92 : vector<32x128xf32>
    %cst_32 = arith.constant 0.000000e+00 : f32
    %94 = vector.broadcast %cst_32 : f32 to vector<32x128xf32>
    %95 = arith.maximumf %93, %94 : vector<32x128xf32>
    %c1_33 = arith.constant 1 : index
    %c0_34 = arith.constant 0 : index
    %c0_35 = arith.constant 0 : index
    %96 = vector.load %arg2[%c1_33, %c0_34, %c0_35] : memref<2x384x128xf32, #tpu.memory_space<vmem>>, vector<1x384x128xf32>
    %97 = vector.shape_cast %96 : vector<1x384x128xf32> to vector<384x128xf32>
    %c1_i32_36 = arith.constant 1 : i32
    %98 = tpu.dynamic_rotate %95 by %c1_i32_36 dim 0 : vector<32x128xf32>, i32 -> vector<32x128xf32>
    %cst_37 = arith.constant 0.000000e+00 : f32
    %99 = vector.broadcast %cst_37 : f32 to vector<32x128xf32>
    %100 = arith.select %18, %99, %98 : vector<32x128xi1>, vector<32x128xf32>
    %c31_i32_38 = arith.constant 31 : i32
    %101 = tpu.dynamic_rotate %95 by %c31_i32_38 dim 0 : vector<32x128xf32>, i32 -> vector<32x128xf32>
    %cst_39 = arith.constant 0.000000e+00 : f32
    %102 = vector.broadcast %cst_39 : f32 to vector<32x128xf32>
    %103 = arith.select %20, %102, %101 : vector<32x128xi1>, vector<32x128xf32>
    %104 = tpu.concatenate %100, %95, %103 in 1 : vector<32x128xf32>, vector<32x128xf32>, vector<32x128xf32> -> vector<32x384xf32>
    %cst_40 = arith.constant dense<0.000000e+00> : vector<32x128xf32>
    %105 = tpu.matmul %104, %97, %cst_40 {dimension_numbers = #tpu.dot_dimension_numbers<[1], [0], [0], [1], [0, 0, 1, 1], [], []>} : vector<32x384xf32>, vector<384x128xf32>, vector<32x128xf32> -> vector<32x128xf32>
    %c2 = arith.constant 2 : index
    %c0_41 = arith.constant 0 : index
    %106 = vector.load %arg3[%c2, %c0_41] : memref<4x128xf32, #tpu.memory_space<vmem>>, vector<1x128xf32>
    %c3 = arith.constant 3 : index
    %c0_42 = arith.constant 0 : index
    %107 = vector.load %arg3[%c3, %c0_42] : memref<4x128xf32, #tpu.memory_space<vmem>>, vector<1x128xf32>
    %cst_43 = arith.constant dense<0.000000e+00> : vector<128xf32>
    %108 = vector.multi_reduction <add>, %105, %cst_43 [0] : vector<32x128xf32> to vector<128xf32>
    %109 = vector.shape_cast %108 : vector<128xf32> to vector<1x128xf32>
    %110 = arith.mulf %105, %105 : vector<32x128xf32>
    %cst_44 = arith.constant dense<0.000000e+00> : vector<128xf32>
    %111 = vector.multi_reduction <add>, %110, %cst_44 [0] : vector<32x128xf32> to vector<128xf32>
    %112 = vector.shape_cast %111 : vector<128xf32> to vector<1x128xf32>
    %cst_45 = arith.constant dense<0.000000e+00> : vector<1x128xf32>
    %113 = tpu.matmul %109, %57, %cst_45 {dimension_numbers = #tpu.dot_dimension_numbers<[1], [0], [0], [1], [0, 0, 1, 1], [], []>} : vector<1x128xf32>, vector<128x128xf32>, vector<1x128xf32> -> vector<1x128xf32>
    %cst_46 = arith.constant 0.001953125 : f32
    %114 = vector.broadcast %cst_46 : f32 to vector<1x128xf32>
    %115 = arith.mulf %113, %114 : vector<1x128xf32>
    %cst_47 = arith.constant dense<0.000000e+00> : vector<1x128xf32>
    %116 = tpu.matmul %112, %57, %cst_47 {dimension_numbers = #tpu.dot_dimension_numbers<[1], [0], [0], [1], [0, 0, 1, 1], [], []>} : vector<1x128xf32>, vector<128x128xf32>, vector<1x128xf32> -> vector<1x128xf32>
    %cst_48 = arith.constant 0.001953125 : f32
    %117 = vector.broadcast %cst_48 : f32 to vector<1x128xf32>
    %118 = arith.mulf %116, %117 : vector<1x128xf32>
    %119 = arith.mulf %115, %115 : vector<1x128xf32>
    %120 = arith.subf %118, %119 : vector<1x128xf32>
    %cst_49 = arith.constant 9.99999974E-6 : f32
    %121 = vector.broadcast %cst_49 : f32 to vector<1x128xf32>
    %122 = arith.addf %120, %121 : vector<1x128xf32>
    %123 = math.rsqrt %122 : vector<1x128xf32>
    %124 = arith.mulf %106, %123 : vector<1x128xf32>
    %125 = vector.broadcast %124 : vector<1x128xf32> to vector<32x128xf32>
    %126 = arith.mulf %105, %125 : vector<32x128xf32>
    %127 = arith.mulf %115, %124 : vector<1x128xf32>
    %128 = arith.subf %107, %127 : vector<1x128xf32>
    %129 = vector.broadcast %128 : vector<1x128xf32> to vector<32x128xf32>
    %130 = arith.addf %126, %129 : vector<32x128xf32>
    %131 = arith.addf %130, %58 : vector<32x128xf32>
    %cst_50 = arith.constant 0.000000e+00 : f32
    %132 = vector.broadcast %cst_50 : f32 to vector<32x128xf32>
    %133 = arith.maximumf %131, %132 : vector<32x128xf32>
    %c0_51 = arith.constant 0 : index
    %c0_52 = arith.constant 0 : index
    %134 = vector.load %arg4[%c0_51, %c0_52] : memref<32x128xf32, #tpu.memory_space<vmem>>, vector<32x128xf32>
    tpu.vector_store %arg4[%c0_51, %c0_52], %133 {strides = array<i32>} : memref<32x128xf32, #tpu.memory_space<vmem>>, vector<32x128xf32>,
    return
  }
  func.func @transform_0(%arg0: i32) -> (i32, i32) {
    %c0_i32 = arith.constant 0 : i32
    %c0_i32_0 = arith.constant 0 : i32
    %c0_i32_1 = arith.constant 0 : i32
    return %c0_i32, %c0_i32_0 : i32, i32
  }
  func.func @transform_1(%arg0: i32) -> (i32, i32, i32) {
    %c0_i32 = arith.constant 0 : i32
    %c0_i32_0 = arith.constant 0 : i32
    %c0_i32_1 = arith.constant 0 : i32
    %c0_i32_2 = arith.constant 0 : i32
    return %c0_i32, %c0_i32_0, %c0_i32_1 : i32, i32, i32
  }
  func.func @transform_2(%arg0: i32) -> (i32, i32) {
    %c0_i32 = arith.constant 0 : i32
    %c0_i32_0 = arith.constant 0 : i32
    %c0_i32_1 = arith.constant 0 : i32
    return %c0_i32, %c0_i32_0 : i32, i32
  }
  func.func @transform_3(%arg0: i32) -> (i32, i32) {
    %c0_i32 = arith.constant 0 : i32
    %c0_i32_0 = arith.constant 0 : i32
    %c0_i32_1 = arith.constant 0 : i32
    return %c0_i32, %c0_i32_0 : i32, i32
  }
}

</mosaic_0001>

<bundles_post_ra>
// kernel: resblock_forward.1
= control target key start
LH: loop header
LB: loop body
LE: loop exit
PB: predicated region body
PF: predicated region fallthrough
CT: control target
= control target key end

     0   :  { %v14_v28 = vlaneseq  ;;  %s2651_s1 = inlined_call_operand.vmem [shape: f32[2,384,128], index: 1, kind: input, shape index: {}]   ;;  %s2652_s0 = inlined_call_operand.vmem [shape: f32[32,128], index: 0, kind: input, shape index: {}, may-alias: {0,3}]   ;;  %s2653_s2 = inlined_call_operand.vmem [shape: f32[4,128], index: 2, kind: input, shape index: {}]   ;;  %s2654_s3 = inlined_call_operand.vmem [shape: f32[32,128], index: 3, kind: output, shape index: {}, may-alias: {0,3}]  }
   0x1   :  { %v376_v0 = vld [vmem:[%s2651_s1 + $0xf8] sm:$0xff]  ;;  %v375_v2 = vld [vmem:[%s2651_s1 + $0xf0] sm:$0xff]  ;;  %v374_v5 = vld [vmem:[%s2651_s1 + $0xe8] sm:$0xff] }
   0x2   :  { %v360_v1 = vld [vmem:[%s2651_s1 + $0x78] sm:$0xff]  ;;  %1378 = vmatprep.subr.mxu0 %v376_v0  ;;  %v359_v4 = vld [vmem:[%s2651_s1 + $0x70] sm:$0xff]  ;;  %v358_v7 = vld [vmem:[%s2651_s1 + $0x68] sm:$0xff]  ;;  %v1927_v35 = vshrl.u32 %v14_v28, 7 }
   0x3   :  { %v392_v3 = vld [vmem:[%s2651_s1 + $0x178] sm:$0xff]  ;;  %1379 = vmatpush3.msra.mxu0 %v360_v1  ;;  %v391_v6 = vld [vmem:[%s2651_s1 + $0x170] sm:$0xff]  ;;  %v390_v8 = vld [vmem:[%s2651_s1 + $0x168] sm:$0xff] }
   0x4   :  { %1574 = vmatprep.subr.mxu1 %v392_v3  ;;  %1380 = vmatprep.subr.mxu0 %v375_v2  ;;  %v373_v9 = vld [vmem:[%s2651_s1 + $0xe0] sm:$0xff]  ;;  %v372_v12 = vld [vmem:[%s2651_s1 + $0xd8] sm:$0xff]  ;;  %v371_v15 = vld [vmem:[%s2651_s1 + $0xd0] sm:$0xff]  ;;  %v1963_v45 = vadd.s32 8, %v1927_v35  ;;  %v23_v50 = vand.u32 15, %v1927_v35  ;;  %vm2656_vm0 = vcmp.lt.s32.totalorder %v1927_v35, 1 }
   0x5   :  { %1575 = vmatpush3.msra.mxu1 %v392_v3  ;;  %1381 = vmatpush3.msra.mxu0 %v359_v4  ;;  %v357_v10 = vld [vmem:[%s2651_s1 + $0x60] sm:$0xff]  ;;  %v356_v13 = vld [vmem:[%s2651_s1 + $0x58] sm:$0xff]  ;;  %v355_v16 = vld [vmem:[%s2651_s1 + $0x50] sm:$0xff]  ;;  %vm2655_vm1 = vcmp.lt.s32.totalorder %v1927_v35, 7  ;;  %v1995_v60 = vadd.s32 24, %v1927_v35  ;;  %v2012_v3 = vadd.s32 16, %v1927_v35 }
   0x6   :  { %1576 = vmatprep.subr.mxu1 %v391_v6  ;;  %1382 = vmatprep.subr.mxu0 %v374_v5  ;;  %v389_v11 = vld [vmem:[%s2651_s1 + $0x160] sm:$0xff]  ;;  %v388_v14 = vld [vmem:[%s2651_s1 + $0x158] sm:$0xff]  ;;  %v387_v17 = vld [vmem:[%s2651_s1 + $0x150] sm:$0xff]  ;;  %v30_v58 = vand.u32 15, %v1963_v45  ;;  %vm2003_vm2 = vcmp.ne.s32.totalorder %v23_v50, 0  ;;  %v2699_v50 = vmov 0 }
   0x7   :  { %1577 = vmatpush3.msra.mxu1 %v391_v6  ;;  %1383 = vmatpush3.msra.mxu0 %v358_v7  ;;  %v370_v18 = vld [vmem:[%s2651_s1 + $0xc8] sm:$0xff]  ;;  %v369_v21 = vld [vmem:[%s2651_s1 + $0xc0] sm:$0xff]  ;;  %v368_v24 = vld [vmem:[%s2651_s1 + $0xb8] sm:$0xff]  ;;  %v44_v7 = vand.u32 15, %v1995_v60 }
   0x8   :  { %1578 = vmatprep.subr.mxu1 %v390_v8  ;;  %1384 = vmatprep.subr.mxu0 %v373_v9  ;;  %v354_v19 = vld [vmem:[%s2651_s1 + $0x48] sm:$0xff]  ;;  %v353_v22 = vld [vmem:[%s2651_s1 + $0x40] sm:$0xff]  ;;  %v352_v25 = vld [vmem:[%s2651_s1 + $0x38] sm:$0xff]  ;;  %vm2019_vm3 = vcmp.ne.s32.totalorder %v30_v58, 15  ;;  %v2705_v58 = vmov 0 }
   0x9   :  { %1579 = vmatpush3.msra.mxu1 %v390_v8  ;;  %1385 = vmatpush3.msra.mxu0 %v357_v10  ;;  %v386_v20 = vld [vmem:[%s2651_s1 + $0x148] sm:$0xff]  ;;  %v385_v23 = vld [vmem:[%s2651_s1 + $0x140] sm:$0xff]  ;;  %v384_v26 = vld [vmem:[%s2651_s1 + $0x138] sm:$0xff]  ;;  %v37_v10 = vand.u32 15, %v2012_v3  ;;  %vm2036_vm4 = vcmp.ne.s32.totalorder %v44_v7, 15 }
   0xa   :  { %1580 = vmatprep.subr.mxu1 %v389_v11  ;;  %1386 = vmatprep.subr.mxu0 %v372_v12  ;;  %v367_v27 = vld [vmem:[%s2651_s1 + $0xb0] sm:$0xff]  ;;  %v366_v31 = vld [vmem:[%s2651_s1 + $0xa8] sm:$0xff]  ;;  %v365_v34 = vld [vmem:[%s2651_s1 + $0xa0] sm:$0xff] }
   0xb   :  { %1581 = vmatpush3.msra.mxu1 %v389_v11  ;;  %1387 = vmatpush3.msra.mxu0 %v356_v13  ;;  %v351_v29 = vld [vmem:[%s2651_s1 + $0x30] sm:$0xff]  ;;  %v350_v32 = vld [vmem:[%s2651_s1 + $0x28] sm:$0xff]  ;;  %v349_v36 = vld [vmem:[%s2651_s1 + $0x20] sm:$0xff]  ;;  %vm2042_vm5 = vcmp.ne.s32.totalorder %v37_v10, 0 }
   0xc   :  { %1582 = vmatprep.subr.mxu1 %v388_v14  ;;  %1388 = vmatprep.subr.mxu0 %v371_v15  ;;  %v383_v30 = vld [vmem:[%s2651_s1 + $0x130] sm:$0xff]  ;;  %v382_v33 = vld [vmem:[%s2651_s1 + $0x128] sm:$0xff]  ;;  %v381_v37 = vld [vmem:[%s2651_s1 + $0x120] sm:$0xff] }
   0xd   :  { %1583 = vmatpush3.msra.mxu1 %v388_v14  ;;  %1389 = vmatpush3.msra.mxu0 %v355_v16  ;;  %v364_v38 = vld [vmem:[%s2651_s1 + $0x98] sm:$0xff]  ;;  %v1947_v41 = vld [vmem:[%s2652_s0] sm:$0xff]  ;;  %v363_v43 = vld [vmem:[%s2651_s1 + $0x90] sm:$0xff] }
   0xe   :  { %1584 = vmatprep.subr.mxu1 %v387_v17  ;;  %1390 = vmatprep.subr.mxu0 %v370_v18  ;;  %v348_v39 = vld [vmem:[%s2651_s1 + $0x18] sm:$0xff]  ;;  %v1960_v44 = vld [vmem:[%s2652_s0 + $0x8] sm:$0xff]  ;;  %v347_v46 = vld [vmem:[%s2651_s1 + $0x10] sm:$0xff]  ;;  %v393_v51 = vrot.slane %v1947_v41, 7  ;;  %v406_v55 = vrot.slane %v1947_v41, 1  ;;  %v280_v18 = vand.u32 127, %v14_v28 }
   0xf   :  { %1585 = vmatpush3.msra.mxu1 %v387_v17  ;;  %1391 = vmatpush3.msra.mxu0 %v354_v19  ;;  %v380_v40 = vld [vmem:[%s2651_s1 + $0x118] sm:$0xff]  ;;  %v379_v47 = vld [vmem:[%s2651_s1 + $0x110] sm:$0xff]  ;;  %v362_v49 = vld [vmem:[%s2651_s1 + $0x88] sm:$0xff]  ;;  %v407_v56 = vrot.slane %v1960_v44, 1  ;;  %v394_v2 = vrot.slane %v1960_v44, 7  ;;  %v86_v17 = vadd.s32 120, %v1927_v35 }
  0x10   :  { %1586 = vmatprep.subr.mxu1 %v386_v20  ;;  %1392 = vmatprep.subr.mxu0 %v369_v21  ;;  %v1952_v42 = vld [vmem:[%s2652_s0 + $0x18] sm:$0xff]  ;;  %v343_v48 = vld [vmem:[%s2652_s0 + $0x10] sm:$0xff]  ;;  %v346_v53 = vld [vmem:[%s2651_s1 + $0x8] sm:$0xff]  ;;  %v85_v21 = vadd.s32 112, %v1927_v35 }
  0x11   :  { %1587 = vmatpush3.msra.mxu1 %v386_v20  ;;  %1393 = vmatpush3.msra.mxu0 %v353_v22  ;;  %v396_v52 = vrot.slane %v1952_v42, 7  ;;  %v378_v54 = vld [vmem:[%s2651_s1 + $0x108] sm:$0xff]  ;;  %v361_v57 = vld [vmem:[%s2651_s1 + $0x80] sm:$0xff]  ;;  %v408_v59 = vrot.slane %v343_v48, 1  ;;  %v409_v62 = vrot.slane %v1952_v42, 1  ;;  %v413_v4 = vsel %vm2655_vm1, %v406_v55, %v407_v56 }
  0x12   :  { %1588 = vmatprep.subr.mxu1 %v385_v23  ;;  %1394 = vmatprep.subr.mxu0 %v368_v24  ;;  %v345_v61 = vld [vmem:[%s2651_s1] sm:$0xff]  ;;  %v400_v9 = vsel %vm2656_vm0, %v393_v51, %v394_v2  ;;  %v395_v11 = vrot.slane %v343_v48, 7  ;;  %v196_v19 = vand.u32 7, %v86_v17  ;;  %v2055_v20 = vand.u32 7, %v280_v18 }
  0x13   :  { %1589 = vmatpush3.msra.mxu1 %v385_v23  ;;  %1395 = vmatpush3.msra.mxu0 %v352_v25  ;;  %v401_v63 = vsel %vm2656_vm0, %v396_v52, %v393_v51  ;;  %v377_v1 = vld [vmem:[%s2651_s1 + $0x100] sm:$0xff]  ;;  %v412_v5 = vsel %vm2655_vm1, %v407_v56, %v408_v59  ;;  %v411_v8 = vsel %vm2655_vm1, %v408_v59, %v409_v62  ;;  %v1801_v22 = vmov 0.0  }
  0x14   :  { %1590 = vmatprep.subr.mxu1 %v384_v26  ;;  %1396 = vmatprep.subr.mxu0 %v367_v27  ;;  %v414_v12 = vsel %vm2655_vm1, %v409_v62, %v406_v55  ;;  %v399_v14 = vsel %vm2656_vm0, %v394_v2, %v395_v11  ;;  %v398_v16 = vsel %vm2656_vm0, %v395_v11, %v396_v52  ;;  %v189_v24 = vand.u32 7, %v85_v21 }
  0x15   :  { %1591 = vmatpush3.msra.mxu1 %v384_v26  ;;  %1397 = vmatpush3.msra.mxu0 %v351_v29  ;;  %vm2060_vm6 = vcmp.eq.s32.totalorder %v196_v19, %v2055_v20  ;;  %v84_v25 = vadd.s32 104, %v1927_v35  ;;  %v1802_v26 = vmov 1.0   ;;  %v83_v29 = vadd.s32 96, %v1927_v35 }
  0x16   :  { %1592 = vmatprep.subr.mxu1 %v383_v30  ;;  %1398 = vmatprep.subr.mxu0 %v366_v31  ;;  %vm2074_vm7 = vcmp.eq.s32.totalorder %v189_v24, %v2055_v20  ;;  %v76_v52 = vadd.s32 40, %v1927_v35  ;;  %v75_v55 = vadd.s32 32, %v1927_v35  ;;  %v2703_v56 = vmov 0 }
  0x17   :  { %1593 = vmatpush3.msra.mxu1 %v383_v30  ;;  %1399 = vmatpush3.msra.mxu0 %v350_v32  ;;  %v182_v28 = vand.u32 7, %v84_v25  ;;  %v175_v31 = vand.u32 7, %v83_v29  ;;  %v82_v32 = vadd.s32 88, %v1927_v35  ;;  %v112_v59 = vand.u32 7, %v1995_v60 }
  0x18   :  { %1594 = vmatprep.subr.mxu1 %v382_v33  ;;  %1400 = vmatprep.subr.mxu0 %v365_v34  ;;  %v105_v62 = vand.u32 7, %v2012_v3  ;;  %v2709_v60 = vmov 0  ;;  %v91_v2 = vand.u32 7, %v1927_v35 }
  0x19   :  { %1595 = vmatpush3.msra.mxu1 %v382_v33  ;;  %1401 = vmatpush3.msra.mxu0 %v349_v36  ;;  %vm2088_vm8 = vcmp.eq.s32.totalorder %v182_v28, %v2055_v20  ;;  %vm2102_vm9 = vcmp.eq.s32.totalorder %v175_v31, %v2055_v20  ;;  %v168_v34 = vand.u32 7, %v82_v32  ;;  %v81_v36 = vadd.s32 80, %v1927_v35 }
  0x1a   :  { %1596 = vmatprep.subr.mxu1 %v381_v37  ;;  %1402 = vmatprep.subr.mxu0 %v364_v38 }
  0x1b   :  { %1597 = vmatpush3.msra.mxu1 %v381_v37  ;;  %1403 = vmatpush3.msra.mxu0 %v348_v39  ;;  %vm2116_vm10 = vcmp.eq.s32.totalorder %v168_v34, %v2055_v20  ;;  %v161_v38 = vand.u32 7, %v81_v36  ;;  %v80_v39 = vadd.s32 72, %v1927_v35 }
  0x1c   :  { %1598 = vmatprep.subr.mxu1 %v380_v40  ;;  %1404 = vmatprep.subr.mxu0 %v363_v43 }
  0x1d   :  { %1599 = vmatpush3.msra.mxu1 %v380_v40  ;;  %1405 = vmatpush3.msra.mxu0 %v347_v46  ;;  %vm2130_vm11 = vcmp.eq.s32.totalorder %v161_v38, %v2055_v20  ;;  %v78_v46 = vadd.s32 56, %v1927_v35 }
  0x1e   :  { %1600 = vmatprep.subr.mxu1 %v379_v47  ;;  %1406 = vmatprep.subr.mxu0 %v362_v49  ;;  %v77_v49 = vadd.s32 48, %v1927_v35 }
  0x1f   :  { %1601 = vmatpush3.msra.mxu1 %v379_v47  ;;  %1407 = vmatpush3.msra.mxu0 %v346_v53  ;;  %v2701_v53 = vmov 0 }
  0x20   :  { %1602 = vmatprep.subr.mxu1 %v378_v54  ;;  %1408 = vmatprep.subr.mxu0 %v361_v57  ;;  %v133_v51 = vand.u32 7, %v77_v49  ;;  %v119_v57 = vand.u32 7, %v75_v55 }
  0x21   :  { %483 = vmatprep.mubr.f32.mxu0 %v1947_v41  ;;  %1409 = vmatpush3.msra.mxu0 %v345_v61  ;;  %v154_v41 = vand.u32 7, %v80_v39  ;;  %v2707_v61 = vmov 0 }
  0x22   :  { %1603 = vmatpush3.msra.mxu1 %v378_v54  ;;  %1247 = vmatmul.mubr.msk.f32.vlgmr.msra.gmra.mxu0 %vm2003_vm2, %v401_v63  ;;  %vm2186_vm15 = vcmp.eq.s32.totalorder %v133_v51, %v2055_v20  ;;  %v126_v54 = vand.u32 7, %v76_v52  ;;  %vm2213_vm0 = vcmp.eq.s32.totalorder %v119_v57, %v2055_v20  ;;  %v98_v63 = vand.u32 7, %v1963_v45 }
  0x23   :  { %1604 = vmatprep.subr.mxu1 %v377_v1  ;;  %1606 = vmatprep.mubr.f32.mxu1 %v413_v4  ;;  %vm2144_vm12 = vcmp.eq.s32.totalorder %v154_v41, %v2055_v20  ;;  %v2702_v53 = vsel %vm2186_vm15, 4294967295, %v2701_v53  ;;  %v2706_v58 = vsel %vm2213_vm0, 4294967295, %v2705_v58  ;;  %v2713_v45 = vmov 0 }
  0x24   :  { %1605 = vmatpush3.msra.mxu1 %v377_v1  ;;  %488 = vmatprep.mubr.f32.mxu0 %v1960_v44  ;;  %vm2200_vm1 = vcmp.eq.s32.totalorder %v126_v54, %v2055_v20  ;;  %v2711_v1 = vmov 0 }
  0x25   :  { %1607 = vmatmul.mubr.msk.f32.vlgmr.msra.gmra.mxu1 %vm2019_vm3, %v412_v5  ;;  %1612 = vmatprep.subr.mxu0 %v1801_v22  ;;  %v2704_v56 = vsel %vm2200_vm1, 4294967295, %v2703_v56 }
  0x26   :  { %1609 = vmatprep.mubr.f32.mxu1 %v411_v8  ;;  %489 = vmatmul.mubr.f32.gmra.mxu0 %v400_v9 }
  0x27   :  { %493 = vmatprep.mubr.f32.mxu0 %v343_v48  ;;  %1647 = vmatprep.subr.mxu1 %v1801_v22  ;;  %v140_v48 = vand.u32 7, %v78_v46 }
  0x28   :  { %1613 = vmatpush3.msk.msra.mxu0 %vm2060_vm6, %v1802_v26  ;;  %1648 = vmatpush3.msk.msra.mxu1 %vm2060_vm6, %v1802_v26 }
  0x29   :  { %1610 = vmatmul.mubr.msk.f32.gmra.mxu1 %vm2036_vm4, %v414_v12  ;;  %1614 = vmatprep.subr.mxu0 %v1801_v22  ;;  %vm2172_vm14 = vcmp.eq.s32.totalorder %v140_v48, %v2055_v20 }
  0x2a   :  { %1249 = vmatmul.mubr.msk.f32.gmra.mxu0 %vm2042_vm5, %v399_v14  ;;  %1649 = vmatprep.subr.mxu1 %v1801_v22  ;;  %v2700_v50 = vsel %vm2172_vm14, 4294967295, %v2699_v50 }
  0x2b   :  { %498 = vmatprep.mubr.f32.mxu0 %v1952_v42  ;;  %1615 = vmatpush3.msk.msra.mxu0 %vm2074_vm7, %v1802_v26  ;;  %v79_v42 = vadd.s32 64, %v1927_v35 }
  0x2c   :  { %1650 = vmatpush3.msk.msra.mxu1 %vm2074_vm7, %v1802_v26  ;;  %1616 = vmatprep.subr.mxu0 %v1801_v22 }
  0x2d   :  { %1651 = vmatprep.subr.mxu1 %v1801_v22  ;;  %1617 = vmatpush3.msk.msra.mxu0 %vm2088_vm8, %v1802_v26  ;;  %v147_v44 = vand.u32 7, %v79_v42 }
  0x2e   :  { %499 = vmatmul.mubr.f32.gmra.mxu0 %v398_v16  ;;  %1652 = vmatpush3.msk.msra.mxu1 %vm2088_vm8, %v1802_v26 }
  0x2f   :  { %1618 = vmatprep.subr.mxu0 %v1801_v22  ;;  %1653 = vmatprep.subr.mxu1 %v1801_v22  ;;  %vm2158_vm13 = vcmp.eq.s32.totalorder %v147_v44, %v2055_v20 }
  0x30   :  { %1619 = vmatpush3.msk.msra.mxu0 %vm2102_vm9, %v1802_v26  ;;  %1654 = vmatpush3.msk.msra.mxu1 %vm2102_vm9, %v1802_v26 }
  0x31   :  { %1620 = vmatprep.subr.mxu0 %v1801_v22  ;;  %1655 = vmatprep.subr.mxu1 %v1801_v22 }
  0x32   :  { %1621 = vmatpush3.msk.msra.mxu0 %vm2116_vm10, %v1802_v26  ;;  %1656 = vmatpush3.msk.msra.mxu1 %vm2116_vm10, %v1802_v26 }
  0x33   :  { %1622 = vmatprep.subr.mxu0 %v1801_v22  ;;  %1657 = vmatprep.subr.mxu1 %v1801_v22 }
  0x34   :  { %1623 = vmatpush3.msk.msra.mxu0 %vm2130_vm11, %v1802_v26  ;;  %1658 = vmatpush3.msk.msra.mxu1 %vm2130_vm11, %v1802_v26 }
  0x35   :  { %1624 = vmatprep.subr.mxu0 %v1801_v22  ;;  %1659 = vmatprep.subr.mxu1 %v1801_v22 }
  0x36   :  { %1625 = vmatpush3.msk.msra.mxu0 %vm2144_vm12, %v1802_v26  ;;  %1660 = vmatpush3.msk.msra.mxu1 %vm2144_vm12, %v1802_v26 }
  0x37   :  { %1626 = vmatprep.subr.mxu0 %v1801_v22  ;;  %1661 = vmatprep.subr.mxu1 %v1801_v22 }
  0x38   :  { %1627 = vmatpush3.msk.msra.mxu0 %vm2158_vm13, %v1802_v26  ;;  %1662 = vmatpush3.msk.msra.mxu1 %vm2158_vm13, %v1802_v26 }
  0x39   :  { %1628 = vmatprep.subr.mxu0 %v1801_v22  ;;  %1663 = vmatprep.subr.mxu1 %v1801_v22 }
  0x3a   :  { %1629 = vmatpush3.msk.msra.mxu0 %vm2172_vm14, %v1802_v26  ;;  %1664 = vmatpush3.msk.msra.mxu1 %vm2172_vm14, %v1802_v26 }
  0x3b   :  { %1630 = vmatprep.subr.mxu0 %v1801_v22  ;;  %1665 = vmatprep.subr.mxu1 %v1801_v22 }
  0x3c   :  { %1631 = vmatpush3.msk.msra.mxu0 %vm2186_vm15, %v1802_v26  ;;  %1666 = vmatpush3.msk.msra.mxu1 %vm2186_vm15, %v1802_v26  ;;  %vm2667_vm15 = vmmov 0  }
  0x3d   :  { %1632 = vmatprep.subr.mxu0 %v1801_v22  ;;  %1667 = vmatprep.subr.mxu1 %v1801_v22 }
  0x3e   :  { %1633 = vmatpush3.msk.msra.mxu0 %vm2200_vm1, %v1802_v26  ;;  %1668 = vmatpush3.msk.msra.mxu1 %vm2200_vm1, %v1802_v26  ;;  %vm2227_vm1 = vcmp.eq.s32.totalorder %v112_v59, %v2055_v20 }
  0x3f   :  { %1634 = vmatprep.subr.mxu0 %v1801_v22  ;;  %1669 = vmatprep.subr.mxu1 %v1801_v22  ;;  %v2708_v61 = vsel %vm2227_vm1, 4294967295, %v2707_v61 }
  0x40   :  { %1635 = vmatpush3.msk.msra.mxu0 %vm2213_vm0, %v1802_v26  ;;  %1670 = vmatpush3.msk.msra.mxu1 %vm2213_vm0, %v1802_v26  ;;  %vm2241_vm0 = vcmp.eq.s32.totalorder %v105_v62, %v2055_v20 }
  0x41   :  { %1636 = vmatprep.subr.mxu0 %v1801_v22  ;;  %1671 = vmatprep.subr.mxu1 %v1801_v22  ;;  %v2710_v60 = vsel %vm2241_vm0, 4294967295, %v2709_v60 }
  0x42   :  { %1637 = vmatpush3.msk.msra.mxu0 %vm2227_vm1, %v1802_v26  ;;  %1672 = vmatpush3.msk.msra.mxu1 %vm2227_vm1, %v1802_v26  ;;  %vm2255_vm1 = vcmp.eq.s32.totalorder %v98_v63, %v2055_v20 }
  0x43   :  { %1638 = vmatprep.subr.mxu0 %v1801_v22  ;;  %1673 = vmatprep.subr.mxu1 %v1801_v22  ;;  %v2712_v1 = vsel %vm2255_vm1, 4294967295, %v2711_v1 }
  0x44   :  { %1639 = vmatpush3.msk.msra.mxu0 %vm2241_vm0, %v1802_v26  ;;  %1674 = vmatpush3.msk.msra.mxu1 %vm2241_vm0, %v1802_v26  ;;  %vm2268_vm0 = vcmp.eq.s32.totalorder %v91_v2, %v2055_v20 }
  0x45   :  { %1640 = vmatprep.subr.mxu0 %v1801_v22  ;;  %1675 = vmatprep.subr.mxu1 %v1801_v22  ;;  %v2714_v45 = vsel %vm2268_vm0, 4294967295, %v2713_v45 }
  0x46   :  { %1641 = vmatpush3.msk.msra.mxu0 %vm2255_vm1, %v1802_v26  ;;  %1644 = vmatprep.mubr.msk.f32.mxu0 %vm2667_vm15, %v1801_v22 }
  0x47   :  { %1642 = vmatprep.subr.mxu0 %v1801_v22  ;;  %1676 = vmatpush3.msk.msra.mxu1 %vm2255_vm1, %v1802_v26 }
  0x48   :  { %1643 = vmatpush3.msk.msra.mxu0 %vm2268_vm0, %v1802_v26  ;;  %1677 = vmatprep.subr.mxu1 %v1801_v22 }
  0x49   :  { %1678 = vmatpush3.msk.msra.mxu1 %vm2268_vm0, %v1802_v26  ;;  %1679 = vmatprep.mubr.msk.f32.mxu1 %vm2667_vm15, %v1801_v22  ;;  %vm2715_vm15 = vcmp.lt.s32.totalorder %v1927_v35, 1  ;;  %vm2716_vm0 = vcmp.lt.s32.totalorder %v1927_v35, 7 }
  0x4a   :  { %vm2717_vm1 = vmmov %vm2716_vm0 }
  0x4b   :  { %vm2718_vm14 = vmmov %vm2716_vm0 }
  0xe2   :  { %v1410_v3 = vpop.f32.mrf.mxu0 }
  0xe4   :  { %v1411_v4 = vpop.f32.mrf.mxu0 }
  0xe5   :  { %v1608_v5 = vpop.f32.mrf.mxu1  ;;  %v1412_v11 = vadd.f32 %v1411_v4, %v1410_v3  ;;  %v1317_v4 = vld [vmem:[%s2651_s1 + $0x278] sm:$0xff] }
  0xe6   :  { %v1413_v7 = vpop.f32.mrf.mxu0  ;;  %1476 = vmatprep.subr.mxu0 %v1317_v4  ;;  %v1289_v4 = vld [vmem:[%s2651_s1 + $0x198] sm:$0xff] }
  0xe7   :  { %v570_v8 = vpop.f32.mrf.mxu1 }
  0xe8   :  { %v1414_v9 = vpop.f32.mrf.mxu0  ;;  %v2286_v19 = vadd.f32 %v1412_v11, %v570_v8  ;;  %v1316_v8 = vld [vmem:[%s2651_s1 + $0x270] sm:$0xff]  ;;  %v1315_v11 = vld [vmem:[%s2651_s1 + $0x268] sm:$0xff] }
  0xe9   :  { %v1611_v10 = vpop.f32.mrf.mxu1  ;;  %v1415_v12 = vadd.f32 %v1414_v9, %v1413_v7  ;;  %v1333_v7 = vld [vmem:[%s2651_s1 + $0x2f8] sm:$0xff]  ;;  %v1300_v9 = vld [vmem:[%s2651_s1 + $0x1f0] sm:$0xff] }
  0xea   :  { %v1416_v14 = vpop.f32.mrf.mxu0  ;;  %v600_v29 = vmul.f32 %v2286_v19, %v2286_v19  ;;  %1682 = vmatprep.subr.mxu1 %v1333_v7 }
  0xeb   :  { %v2284_v16 = vadd.f32 %v1608_v5, %v1415_v12  ;;  %v580_v18 = vpop.f32.mrf.mxu1  ;;  %v1301_v5 = vld [vmem:[%s2651_s1 + $0x1f8] sm:$0xff]  ;;  %v1299_v12 = vld [vmem:[%s2651_s1 + $0x1e8] sm:$0xff] }
  0xec   :  { %v1417_v17 = vpop.f32.mrf.mxu0 }
  0xed   :  { %v1418_v20 = vadd.f32 %v1417_v17, %v1416_v14  ;;  %v601_v24 = vmul.f32 %v2284_v16, %v2284_v16  ;;  %v591_v31 = vadd.f32 %v2284_v16, %v2286_v19  ;;  %v1331_v14 = vld [vmem:[%s2651_s1 + $0x2e8] sm:$0xff]  ;;  %v1314_v17 = vld [vmem:[%s2651_s1 + $0x260] sm:$0xff] }
  0xee   :  { %v1419_v21 = vpop.f32.mrf.mxu0 }
  0xef   :  { %v2290_v25 = vadd.f32 %v1418_v20, %v580_v18  ;;  %v604_v38 = vadd.f32 %v601_v24, %v600_v29  ;;  %v1298_v18 = vld [vmem:[%s2651_s1 + $0x1e0] sm:$0xff]  ;;  %v1297_v24 = vld [vmem:[%s2651_s1 + $0x1d8] sm:$0xff]  ;;  %v1312_v29 = vld [vmem:[%s2651_s1 + $0x250] sm:$0xff] }
  0xf0   :  { %v1420_v28 = vpop.f32.mrf.mxu0  ;;  %v1330_v20 = vld [vmem:[%s2651_s1 + $0x2e0] sm:$0xff] }
  0xf1   :  { %v602_v32 = vmul.f32 %v2290_v25, %v2290_v25  ;;  %v1421_v34 = vadd.f32 %v1420_v28, %v1419_v21  ;;  %v592_v36 = vadd.f32 %v591_v31, %v2290_v25  ;;  %v1313_v21 = vld [vmem:[%s2651_s1 + $0x258] sm:$0xff]  ;;  %v1296_v31 = vld [vmem:[%s2651_s1 + $0x1d0] sm:$0xff] }
  0xf2   :  { %v1329_v28 = vld [vmem:[%s2651_s1 + $0x2d8] sm:$0xff] }
  0xf3   :  { %v2299_v39 = vadd.f32 %v1611_v10, %v1421_v34  ;;  %v605_v41 = vadd.f32 %v604_v38, %v602_v32  ;;  %v1332_v10 = vld [vmem:[%s2651_s1 + $0x2f0] sm:$0xff]  ;;  %v1311_v34 = vld [vmem:[%s2651_s1 + $0x248] sm:$0xff] }
  0xf4   :  { %v1328_v32 = vld [vmem:[%s2651_s1 + $0x2d0] sm:$0xff]  ;;  %v1327_v38 = vld [vmem:[%s2651_s1 + $0x2c8] sm:$0xff] }
  0xf5   :  { %v593_v42 = vadd.f32 %v592_v36, %v2299_v39  ;;  %v603_v44 = vmul.f32 %v2299_v39, %v2299_v39  ;;  %v1295_v36 = vld [vmem:[%s2651_s1 + $0x1c8] sm:$0xff] }
  0xf7   :  { %v594_v46 = vrot.slane %v593_v42, 4  ;;  %v606_v48 = vadd.f32 %v605_v41, %v603_v44  ;;  %v1310_v41 = vld [vmem:[%s2651_s1 + $0x240] sm:$0xff] }
  0xf8   :  { %v1326_v44 = vld [vmem:[%s2651_s1 + $0x2c0] sm:$0xff] }
  0xf9   :  { %v595_v49 = vadd.f32 %v594_v46, %v593_v42  ;;  %v607_v51 = vrot.slane %v606_v48, 4  ;;  %v1294_v42 = vld [vmem:[%s2651_s1 + $0x1c0] sm:$0xff]  ;;  %v1309_v46 = vld [vmem:[%s2651_s1 + $0x238] sm:$0xff] }
  0xfb   :  { %v596_v52 = vrot.slane %v595_v49, 2  ;;  %v608_v54 = vadd.f32 %v607_v51, %v606_v48  ;;  %v1293_v48 = vld [vmem:[%s2651_s1 + $0x1b8] sm:$0xff]  ;;  %v1308_v51 = vld [vmem:[%s2651_s1 + $0x230] sm:$0xff] }
  0xfd   :  { %v597_v55 = vadd.f32 %v596_v52, %v595_v49  ;;  %v609_v57 = vrot.slane %v608_v54, 2  ;;  %v1325_v49 = vld [vmem:[%s2651_s1 + $0x2b8] sm:$0xff]  ;;  %v1292_v52 = vld [vmem:[%s2651_s1 + $0x1b0] sm:$0xff] }
  0xff   :  { %v598_v59 = vrot.slane %v597_v55, 1  ;;  %v610_v62 = vadd.f32 %v609_v57, %v608_v54  ;;  %v1324_v54 = vld [vmem:[%s2651_s1 + $0x2b0] sm:$0xff]  ;;  %v1291_v57 = vld [vmem:[%s2651_s1 + $0x1a8] sm:$0xff] }
 0x101   :  { %v599_v63 = vadd.f32 %v598_v59, %v597_v55  ;;  %v611_v2 = vrot.slane %v610_v62, 1  ;;  %v1307_v55 = vld [vmem:[%s2651_s1 + $0x228] sm:$0xff] }
 0x102   :  { %v1323_v59 = vld [vmem:[%s2651_s1 + $0x2a8] sm:$0xff] }
 0x103   :  { %1645 = vmatmul.mubr.f32.vlgmr.msra.gmra.mxu0 %v599_v63  ;;  %v612_v3 = vadd.f32 %v611_v2, %v610_v62  ;;  %v1306_v62 = vld [vmem:[%s2651_s1 + $0x220] sm:$0xff] }
 0x104   :  { %1477 = vmatpush3.msra.mxu0 %v1301_v5  ;;  %v1290_v63 = vld [vmem:[%s2651_s1 + $0x1a0] sm:$0xff]  ;;  %v1321_v5 = vld [vmem:[%s2651_s1 + $0x298] sm:$0xff] }
 0x105   :  { %1680 = vmatmul.mubr.f32.vlgmr.msra.gmra.mxu1 %v612_v3  ;;  %1478 = vmatprep.subr.mxu0 %v1316_v8  ;;  %v1322_v2 = vld [vmem:[%s2651_s1 + $0x2a0] sm:$0xff]  ;;  %v1305_v3 = vld [vmem:[%s2651_s1 + $0x218] sm:$0xff]  ;;  %v1288_v8 = vld [vmem:[%s2651_s1 + $0x190] sm:$0xff] }
 0x106   :  { %1683 = vmatpush3.msra.mxu1 %v1333_v7  ;;  %1479 = vmatpush3.msra.mxu0 %v1300_v9  ;;  %v1304_v7 = vld [vmem:[%s2651_s1 + $0x210] sm:$0xff] }
 0x107   :  { %1684 = vmatprep.subr.mxu1 %v1332_v10  ;;  %1480 = vmatprep.subr.mxu0 %v1315_v11  ;;  %v1320_v9 = vld [vmem:[%s2651_s1 + $0x290] sm:$0xff]  ;;  %v1287_v11 = vld [vmem:[%s2651_s1 + $0x188] sm:$0xff] }
 0x108   :  { %1685 = vmatpush3.msra.mxu1 %v1332_v10  ;;  %1481 = vmatpush3.msra.mxu0 %v1299_v12  ;;  %v1303_v10 = vld [vmem:[%s2651_s1 + $0x208] sm:$0xff] }
 0x109   :  { %1686 = vmatprep.subr.mxu1 %v1331_v14  ;;  %1482 = vmatprep.subr.mxu0 %v1314_v17  ;;  %v1319_v12 = vld [vmem:[%s2651_s1 + $0x288] sm:$0xff]  ;;  %v1286_v17 = vld [vmem:[%s2651_s1 + $0x180] sm:$0xff] }
 0x10a   :  { %1687 = vmatpush3.msra.mxu1 %v1331_v14  ;;  %1483 = vmatpush3.msra.mxu0 %v1298_v18  ;;  %v1302_v14 = vld [vmem:[%s2651_s1 + $0x200] sm:$0xff] }
 0x10b   :  { %1688 = vmatprep.subr.mxu1 %v1330_v20  ;;  %1484 = vmatprep.subr.mxu0 %v1313_v21  ;;  %v1318_v18 = vld [vmem:[%s2651_s1 + $0x280] sm:$0xff] }
 0x10c   :  { %1689 = vmatpush3.msra.mxu1 %v1330_v20  ;;  %1485 = vmatpush3.msra.mxu0 %v1297_v24 }
 0x10d   :  { %1690 = vmatprep.subr.mxu1 %v1329_v28  ;;  %1486 = vmatprep.subr.mxu0 %v1312_v29 }
 0x10e   :  { %1691 = vmatpush3.msra.mxu1 %v1329_v28  ;;  %1487 = vmatpush3.msra.mxu0 %v1296_v31 }
 0x10f   :  { %1692 = vmatprep.subr.mxu1 %v1328_v32  ;;  %1488 = vmatprep.subr.mxu0 %v1311_v34 }
 0x110   :  { %1693 = vmatpush3.msra.mxu1 %v1328_v32  ;;  %1489 = vmatpush3.msra.mxu0 %v1295_v36 }
 0x111   :  { %1694 = vmatprep.subr.mxu1 %v1327_v38  ;;  %1490 = vmatprep.subr.mxu0 %v1310_v41  ;;  %v2454_v41 = vsub.s32 0, %v1927_v35 }
 0x112   :  { %1695 = vmatpush3.msra.mxu1 %v1327_v38  ;;  %1491 = vmatpush3.msra.mxu0 %v1294_v42  ;;  %v589_v38 = vld [vmem:[%s2653_s2] sm:$0x1] }
 0x113   :  { %1696 = vmatprep.subr.mxu1 %v1326_v44  ;;  %1492 = vmatprep.subr.mxu0 %v1309_v46  ;;  %v590_v46 = vld [vmem:[%s2653_s2 + $0x1] sm:$0x1] }
 0x114   :  { %1697 = vmatpush3.msra.mxu1 %v1326_v44  ;;  %1493 = vmatpush3.msra.mxu0 %v1293_v48 }
 0x115   :  { %1698 = vmatprep.subr.mxu1 %v1325_v49  ;;  %1494 = vmatprep.subr.mxu0 %v1308_v51 }
 0x116   :  { %1699 = vmatpush3.msra.mxu1 %v1325_v49  ;;  %1495 = vmatpush3.msra.mxu0 %v1292_v52 }
 0x117   :  { %1700 = vmatprep.subr.mxu1 %v1324_v54  ;;  %1496 = vmatprep.subr.mxu0 %v1307_v55 }
 0x118   :  { %1701 = vmatpush3.msra.mxu1 %v1324_v54  ;;  %1497 = vmatpush3.msra.mxu0 %v1291_v57 }
 0x119   :  { %1702 = vmatprep.subr.mxu1 %v1323_v59  ;;  %1498 = vmatprep.subr.mxu0 %v1306_v62 }
 0x11a   :  { %1703 = vmatpush3.msra.mxu1 %v1323_v59  ;;  %1499 = vmatpush3.msra.mxu0 %v1290_v63 }
 0x11b   :  { %1704 = vmatprep.subr.mxu1 %v1322_v2  ;;  %1500 = vmatprep.subr.mxu0 %v1305_v3 }
 0x11c   :  { %1705 = vmatpush3.msra.mxu1 %v1322_v2  ;;  %1501 = vmatpush3.msra.mxu0 %v1289_v4 }
 0x11d   :  { %1706 = vmatprep.subr.mxu1 %v1321_v5  ;;  %1502 = vmatprep.subr.mxu0 %v1304_v7 }
 0x11e   :  { %1707 = vmatpush3.msra.mxu1 %v1321_v5  ;;  %1503 = vmatpush3.msra.mxu0 %v1288_v8 }
 0x11f   :  { %1708 = vmatprep.subr.mxu1 %v1320_v9  ;;  %1504 = vmatprep.subr.mxu0 %v1303_v10 }
 0x120   :  { %1709 = vmatpush3.msra.mxu1 %v1320_v9  ;;  %1505 = vmatpush3.msra.mxu0 %v1287_v11 }
 0x121   :  { %1710 = vmatprep.subr.mxu1 %v1319_v12  ;;  %1506 = vmatprep.subr.mxu0 %v1302_v14 }
 0x122   :  { %1711 = vmatpush3.msra.mxu1 %v1319_v12  ;;  %1507 = vmatpush3.msra.mxu0 %v1286_v17 }
 0x123   :  { %1712 = vmatprep.subr.mxu1 %v1318_v18  ;;  %1720 = vmatprep.subr.mxu0 %v1801_v22 }
 0x124   :  { %1713 = vmatpush3.msra.mxu1 %v1318_v18 }
 0x125   :  { %1755 = vmatprep.subr.mxu1 %v1801_v22 }
 0x1c3   :  { %v679_v20 = vpop.f32.mrf.mxu0 }
 0x1c4   :  { %v683_v21 = vmul.f32 0.001953125, %v679_v20 }
 0x1c5   :  { %v1646_v24 = vpop.f32.mrf.mxu0  ;;  %v750_v28 = vpop.f32.mrf.mxu1 }
 0x1c6   :  { %v755_v29 = vmul.f32 %v683_v21, %v683_v21  ;;  %v754_v31 = vmul.f32 0.001953125, %v750_v28 }
 0x1c7   :  { %v1681_v32 = vpop.f32.mrf.mxu1 }
 0x1c8   :  { %v756_v34 = vsub.f32 %v754_v31, %v755_v29 }
 0x1ca   :  { %v757_v36 = vadd.f32 1e-05, %v756_v34 }
 0x1cc   :  { %1793 = vrsqrt.f32 %v757_v36 }
 0x1d9   :  { %v1794_v42 = vpop.eup %1793 }
 0x1da   :  { %v759_v44 = vmul.f32 %v1794_v42, %v589_v38 }
 0x1dc   :  { %v763_v48 = vrot.slane %v759_v44, %v2454_v41  ;;  %v768_v49 = vmul.f32 %v759_v44, %v683_v21 }
 0x1de   :  { %v769_v51 = vsub.f32 %v590_v46, %v768_v49  ;;  %v764_v52 = vmul.f32 %v763_v48, %v2286_v19  ;;  %v767_v55 = vmul.f32 %v763_v48, %v2299_v39  ;;  %v765_v57 = vmul.f32 %v763_v48, %v2284_v16 }
 0x1df   :  { %v766_v59 = vmul.f32 %v763_v48, %v2290_v25 }
 0x1e0   :  { %v773_v54 = vrot.slane %v769_v51, %v2454_v41 }
 0x1e2   :  { %v774_v62 = vadd.f32 %v773_v54, %v764_v52  ;;  %v777_v63 = vadd.f32 %v773_v54, %v767_v55  ;;  %v775_v2 = vadd.f32 %v773_v54, %v765_v57  ;;  %v776_v3 = vadd.f32 %v773_v54, %v766_v59 }
 0x1e4   :  { %v778_v4 = vmax.f32 %v774_v62, 0.0  ;;  %v781_v5 = vmax.f32 %v777_v63, 0.0  ;;  %v779_v7 = vmax.f32 %v775_v2, 0.0  ;;  %v780_v8 = vmax.f32 %v776_v3, 0.0 }
 0x1e6   :  { %v831_v9 = vrot.slane %v778_v4, 7  ;;  %919 = vmatprep.mubr.f32.mxu0 %v778_v4  ;;  %v834_v10 = vrot.slane %v781_v5, 7  ;;  %v843_v19 = vrot.slane %v778_v4, 1  ;;  %v844_v11 = vrot.slane %v779_v7, 1 }
 0x1e7   :  { %v845_v12 = vrot.slane %v780_v8, 1  ;;  %v846_v14 = vrot.slane %v781_v5, 1  ;;  %v832_v39 = vrot.slane %v779_v7, 7  ;;  %v833_v20 = vrot.slane %v780_v8, 7 }
 0x1e8   :  { %v838_v16 = vsel %vm2715_vm15, %v834_v10, %v831_v9  ;;  %v849_v25 = vsel %vm2716_vm0, %v843_v19, %v844_v11  ;;  %vm2719_vm0 = vmmov %vm2715_vm15 }
 0x1e9   :  { %1335 = vmatmul.mubr.msk.f32.vlgmr.msra.gmra.mxu0 %vm2003_vm2, %v838_v16  ;;  %1714 = vmatprep.mubr.f32.mxu1 %v849_v25  ;;  %v848_v17 = vsel %vm2717_vm1, %v844_v11, %v845_v12  ;;  %v847_v18 = vsel %vm2718_vm14, %v845_v12, %v846_v14  ;;  %v837_v0 = vsel %vm2719_vm0, %v831_v9, %v832_v39  ;;  %vm2720_vm2 = vmmov %vm2719_vm0  ;;  %v1025_v12 = vld [vmem:[%s2653_s2 + $0x2] sm:$0x1]  ;;  %v1026_v25 = vld [vmem:[%s2653_s2 + $0x3] sm:$0x1] }
 0x1ea   :  { %924 = vmatprep.mubr.f32.mxu0 %v779_v7  ;;  %1715 = vmatmul.mubr.msk.f32.vlgmr.msra.gmra.mxu1 %vm2019_vm3, %v848_v17  ;;  %v850_v6 = vsel %vm2717_vm1, %v846_v14, %v843_v19  ;;  %v836_v23 = vsel %vm2720_vm2, %v832_v39, %v833_v20  ;;  %vm2721_vm3 = vmmov %vm2719_vm0 }
 0x1eb   :  { %1717 = vmatprep.mubr.f32.mxu1 %v847_v18  ;;  %1721 = vmatpush3.msk.msra.mxu0 %vm2060_vm6, %v1802_v26  ;;  %v835_v13 = vsel %vm2721_vm3, %v833_v20, %v834_v10 }
 0x1ec   :  { %1722 = vmatprep.subr.mxu0 %v1801_v22  ;;  %1756 = vmatpush3.msk.msra.mxu1 %vm2060_vm6, %v1802_v26  ;;  %vm2724_vm6 = vnez %v2704_v56 }
 0x1ed   :  { %925 = vmatmul.mubr.f32.gmra.mxu0 %v837_v0  ;;  %1757 = vmatprep.subr.mxu1 %v1801_v22 }
 0x1ee   :  { %929 = vmatprep.mubr.f32.mxu0 %v780_v8  ;;  %1718 = vmatmul.mubr.msk.f32.gmra.mxu1 %vm2036_vm4, %v850_v6  ;;  %vm2722_vm4 = vnez %v2700_v50 }
 0x1ef   :  { %1723 = vmatpush3.msk.msra.mxu0 %vm2074_vm7, %v1802_v26  ;;  %1758 = vmatpush3.msk.msra.mxu1 %vm2074_vm7, %v1802_v26  ;;  %vm2725_vm7 = vnez %v2706_v58 }
 0x1f0   :  { %1724 = vmatprep.subr.mxu0 %v1801_v22  ;;  %1759 = vmatprep.subr.mxu1 %v1801_v22 }
 0x1f1   :  { %1337 = vmatmul.mubr.msk.f32.gmra.mxu0 %vm2042_vm5, %v836_v23  ;;  %1760 = vmatpush3.msk.msra.mxu1 %vm2088_vm8, %v1802_v26  ;;  %vm2723_vm5 = vnez %v2702_v53 }
 0x1f2   :  { %934 = vmatprep.mubr.f32.mxu0 %v781_v5  ;;  %1725 = vmatpush3.msk.msra.mxu0 %vm2088_vm8, %v1802_v26  ;;  %vm2726_vm8 = vnez %v2708_v61 }
 0x1f3   :  { %1726 = vmatprep.subr.mxu0 %v1801_v22  ;;  %1761 = vmatprep.subr.mxu1 %v1801_v22 }
 0x1f4   :  { %1727 = vmatpush3.msk.msra.mxu0 %vm2102_vm9, %v1802_v26  ;;  %1762 = vmatpush3.msk.msra.mxu1 %vm2102_vm9, %v1802_v26  ;;  %vm2727_vm9 = vnez %v2710_v60 }
 0x1f5   :  { %935 = vmatmul.mubr.f32.gmra.mxu0 %v835_v13  ;;  %1728 = vmatprep.subr.mxu0 %v1801_v22 }
 0x1f6   :  { %1729 = vmatpush3.msk.msra.mxu0 %vm2116_vm10, %v1802_v26  ;;  %1763 = vmatprep.subr.mxu1 %v1801_v22 }
 0x1f7   :  { %1730 = vmatprep.subr.mxu0 %v1801_v22  ;;  %1764 = vmatpush3.msk.msra.mxu1 %vm2116_vm10, %v1802_v26  ;;  %vm2728_vm10 = vnez %v2712_v1 }
 0x1f8   :  { %1731 = vmatpush3.msk.msra.mxu0 %vm2130_vm11, %v1802_v26  ;;  %1765 = vmatprep.subr.mxu1 %v1801_v22 }
 0x1f9   :  { %1732 = vmatprep.subr.mxu0 %v1801_v22  ;;  %1766 = vmatpush3.msk.msra.mxu1 %vm2130_vm11, %v1802_v26  ;;  %vm2729_vm11 = vmmov 0  }
 0x1fa   :  { %1733 = vmatpush3.msk.msra.mxu0 %vm2144_vm12, %v1802_v26  ;;  %1767 = vmatprep.subr.mxu1 %v1801_v22 }
 0x1fb   :  { %1734 = vmatprep.subr.mxu0 %v1801_v22  ;;  %1768 = vmatpush3.msk.msra.mxu1 %vm2144_vm12, %v1802_v26  ;;  %vm2730_vm12 = vnez %v2714_v45 }
 0x1fc   :  { %1735 = vmatpush3.msk.msra.mxu0 %vm2158_vm13, %v1802_v26  ;;  %1769 = vmatprep.subr.mxu1 %v1801_v22 }
 0x1fd   :  { %1736 = vmatprep.subr.mxu0 %v1801_v22  ;;  %1770 = vmatpush3.msk.msra.mxu1 %vm2158_vm13, %v1802_v26 }
 0x1fe   :  { %1737 = vmatpush3.msk.msra.mxu0 %vm2722_vm4, %v1802_v26  ;;  %1771 = vmatprep.subr.mxu1 %v1801_v22 }
 0x1ff   :  { %1738 = vmatprep.subr.mxu0 %v1801_v22  ;;  %1772 = vmatpush3.msk.msra.mxu1 %vm2722_vm4, %v1802_v26 }
 0x200   :  { %1739 = vmatpush3.msk.msra.mxu0 %vm2723_vm5, %v1802_v26  ;;  %1773 = vmatprep.subr.mxu1 %v1801_v22 }
 0x201   :  { %1740 = vmatprep.subr.mxu0 %v1801_v22  ;;  %1774 = vmatpush3.msk.msra.mxu1 %vm2723_vm5, %v1802_v26 }
 0x202   :  { %1741 = vmatpush3.msk.msra.mxu0 %vm2724_vm6, %v1802_v26  ;;  %1775 = vmatprep.subr.mxu1 %v1801_v22 }
 0x203   :  { %1742 = vmatprep.subr.mxu0 %v1801_v22  ;;  %1776 = vmatpush3.msk.msra.mxu1 %vm2724_vm6, %v1802_v26 }
 0x204   :  { %1743 = vmatpush3.msk.msra.mxu0 %vm2725_vm7, %v1802_v26  ;;  %1777 = vmatprep.subr.mxu1 %v1801_v22 }
 0x205   :  { %1744 = vmatprep.subr.mxu0 %v1801_v22  ;;  %1778 = vmatpush3.msk.msra.mxu1 %vm2725_vm7, %v1802_v26 }
 0x206   :  { %1745 = vmatpush3.msk.msra.mxu0 %vm2726_vm8, %v1802_v26  ;;  %1779 = vmatprep.subr.mxu1 %v1801_v22 }
 0x207   :  { %1746 = vmatprep.subr.mxu0 %v1801_v22  ;;  %1780 = vmatpush3.msk.msra.mxu1 %vm2726_vm8, %v1802_v26 }
 0x208   :  { %1747 = vmatpush3.msk.msra.mxu0 %vm2727_vm9, %v1802_v26  ;;  %1781 = vmatprep.subr.mxu1 %v1801_v22 }
 0x209   :  { %1748 = vmatprep.subr.mxu0 %v1801_v22  ;;  %1782 = vmatpush3.msk.msra.mxu1 %vm2727_vm9, %v1802_v26 }
 0x20a   :  { %1749 = vmatpush3.msk.msra.mxu0 %vm2728_vm10, %v1802_v26  ;;  %1783 = vmatprep.subr.mxu1 %v1801_v22 }
 0x20b   :  { %1750 = vmatprep.subr.mxu0 %v1801_v22  ;;  %1752 = vmatprep.mubr.msk.f32.mxu0 %vm2729_vm11, %v1801_v22 }
 0x20c   :  { %1751 = vmatpush3.msk.msra.mxu0 %vm2730_vm12, %v1802_v26  ;;  %1784 = vmatpush3.msk.msra.mxu1 %vm2728_vm10, %v1802_v26 }
 0x20d   :  { %1785 = vmatprep.subr.mxu1 %v1801_v22  ;;  %1787 = vmatprep.mubr.msk.f32.mxu1 %vm2729_vm11, %v1801_v22 }
 0x20e   :  { %1786 = vmatpush3.msk.msra.mxu1 %vm2730_vm12, %v1802_v26 }
 0x2a9   :  { %v1508_v35 = vpop.f32.mrf.mxu0 }
 0x2aa   :  { %v1716_v15 = vpop.f32.mrf.mxu1 }
 0x2ab   :  { %v1509_v27 = vpop.f32.mrf.mxu0 }
 0x2ac   :  { %v1006_v30 = vpop.f32.mrf.mxu1  ;;  %v1510_v40 = vadd.f32 %v1509_v27, %v1508_v35 }
 0x2ad   :  { %v1511_v33 = vpop.f32.mrf.mxu0 }
 0x2ae   :  { %v1719_v47 = vpop.f32.mrf.mxu1  ;;  %v1007_v58 = vadd.f32 %v1510_v40, %v1006_v30  ;;  %v1798_v40 = vld [vmem:[%s2652_s0 + $0x8] sm:$0xff] }
 0x2af   :  { %v1512_v37 = vpop.f32.mrf.mxu0 }
 0x2b0   :  { %v1513_v43 = vadd.f32 %v1512_v37, %v1511_v33  ;;  %v1016_v60 = vpop.f32.mrf.mxu1  ;;  %v1036_v26 = vmul.f32 %v1007_v58, %v1007_v58  ;;  %v1797_v33 = vld [vmem:[%s2652_s0] sm:$0xff] }
 0x2b1   :  { %v1514_v50 = vpop.f32.mrf.mxu0 }
 0x2b2   :  { %v1012_v53 = vadd.f32 %v1716_v15, %v1513_v43 }
 0x2b3   :  { %v1515_v56 = vpop.f32.mrf.mxu0 }
 0x2b4   :  { %v1516_v61 = vadd.f32 %v1515_v56, %v1514_v50  ;;  %v1037_v1 = vmul.f32 %v1012_v53, %v1012_v53  ;;  %v1027_v24 = vadd.f32 %v1012_v53, %v1007_v58 }
 0x2b5   :  { %v1517_v22 = vpop.f32.mrf.mxu0 }
 0x2b6   :  { %v1017_v21 = vadd.f32 %v1516_v61, %v1016_v60  ;;  %v1040_v31 = vadd.f32 %v1037_v1, %v1036_v26 }
 0x2b7   :  { %v1518_v45 = vpop.f32.mrf.mxu0 }
 0x2b8   :  { %v1038_v28 = vmul.f32 %v1017_v21, %v1017_v21  ;;  %v1519_v29 = vadd.f32 %v1518_v45, %v1517_v22  ;;  %v1028_v32 = vadd.f32 %v1027_v24, %v1017_v21 }
 0x2ba   :  { %v1022_v34 = vadd.f32 %v1719_v47, %v1519_v29  ;;  %v1041_v36 = vadd.f32 %v1040_v31, %v1038_v28  ;;  %v1799_v47 = vld [vmem:[%s2652_s0 + $0x10] sm:$0xff] }
 0x2bc   :  { %v1029_v38 = vadd.f32 %v1028_v32, %v1022_v34  ;;  %v1039_v42 = vmul.f32 %v1022_v34, %v1022_v34 }
 0x2be   :  { %v1030_v44 = vrot.slane %v1029_v38, 4  ;;  %v1042_v46 = vadd.f32 %v1041_v36, %v1039_v42 }
 0x2c0   :  { %v1031_v48 = vadd.f32 %v1030_v44, %v1029_v38  ;;  %v1043_v49 = vrot.slane %v1042_v46, 4 }
 0x2c2   :  { %v1032_v51 = vrot.slane %v1031_v48, 2  ;;  %v1044_v52 = vadd.f32 %v1043_v49, %v1042_v46 }
 0x2c4   :  { %v1033_v54 = vadd.f32 %v1032_v51, %v1031_v48  ;;  %v1045_v55 = vrot.slane %v1044_v52, 2 }
 0x2c6   :  { %v1034_v57 = vrot.slane %v1033_v54, 1  ;;  %v1046_v59 = vadd.f32 %v1045_v55, %v1044_v52 }
 0x2c8   :  { %v1035_v62 = vadd.f32 %v1034_v57, %v1033_v54  ;;  %v1047_v63 = vrot.slane %v1046_v59, 1 }
 0x2ca   :  { %1753 = vmatmul.mubr.f32.vlgmr.msra.gmra.mxu0 %v1035_v62  ;;  %v1048_v2 = vadd.f32 %v1047_v63, %v1046_v59 }
 0x2cc   :  { %1788 = vmatmul.mubr.f32.vlgmr.msra.gmra.mxu1 %v1048_v2 }
 0x38a   :  { %v1115_v3 = vpop.f32.mrf.mxu0 }
 0x38b   :  { %v1119_v4 = vmul.f32 0.001953125, %v1115_v3 }
 0x38c   :  { %v1754_v5 = vpop.f32.mrf.mxu0  ;;  %v1186_v7 = vpop.f32.mrf.mxu1 }
 0x38d   :  { %v1191_v8 = vmul.f32 %v1119_v4, %v1119_v4  ;;  %v1190_v9 = vmul.f32 0.001953125, %v1186_v7 }
 0x38e   :  { %v1789_v10 = vpop.f32.mrf.mxu1 }
 0x38f   :  { %v1192_v19 = vsub.f32 %v1190_v9, %v1191_v8 }
 0x391   :  { %v1193_v11 = vadd.f32 1e-05, %v1192_v19 }
 0x393   :  { %1795 = vrsqrt.f32 %v1193_v11 }
 0x3a0   :  { %v1796_v14 = vpop.eup %1795 }
 0x3a1   :  { %v1195_v16 = vmul.f32 %v1796_v14, %v1025_v12 }
 0x3a3   :  { %v1199_v39 = vrot.slane %v1195_v16, %v2454_v41  ;;  %v1204_v17 = vmul.f32 %v1195_v16, %v1119_v4 }
 0x3a5   :  { %v1205_v18 = vsub.f32 %v1026_v25, %v1204_v17  ;;  %v1200_v0 = vmul.f32 %v1199_v39, %v1007_v58  ;;  %v1201_v20 = vmul.f32 %v1199_v39, %v1012_v53  ;;  %v1202_v6 = vmul.f32 %v1199_v39, %v1017_v21 }
 0x3a6   :  { %v1203_v23 = vmul.f32 %v1199_v39, %v1022_v34 }
 0x3a7   :  { %v1209_v13 = vrot.slane %v1205_v18, %v2454_v41  ;;  %v1800_v41 = vld [vmem:[%s2652_s0 + $0x18] sm:$0xff] }
 0x3a9   :  { %v1210_v35 = vadd.f32 %v1209_v13, %v1200_v0  ;;  %v1211_v15 = vadd.f32 %v1209_v13, %v1201_v20  ;;  %v1212_v27 = vadd.f32 %v1209_v13, %v1202_v6  ;;  %v1213_v30 = vadd.f32 %v1209_v13, %v1203_v23 }
 0x3ab   :  { %v1214_v37 = vadd.f32 %v1797_v33, %v1210_v35  ;;  %v1215_v43 = vadd.f32 %v1798_v40, %v1211_v15  ;;  %v1216_v50 = vadd.f32 %v1799_v47, %v1212_v27  ;;  %v1217_v53 = vadd.f32 %v1800_v41, %v1213_v30 }
 0x3ad   :  { %v1218_v56 = vmax.f32 %v1214_v37, 0.0  ;;  %v1219_v58 = vmax.f32 %v1215_v43, 0.0  ;;  %v1220_v61 = vmax.f32 %v1216_v50, 0.0  ;;  %v1221_v60 = vmax.f32 %v1217_v53, 0.0 }
 0x3af   :  { %1222 = vst [vmem:[%s2654_s3] sm:$0xff] %v1218_v56  ;;  %1223 = vst [vmem:[%s2654_s3 + $0x8] sm:$0xff] %v1219_v58 }
 0x3b0   :  { %1224 = vst [vmem:[%s2654_s3 + $0x10] sm:$0xff] %v1220_v61  ;;  %1225 = vst [vmem:[%s2654_s3 + $0x18] sm:$0xff] %v1221_v60 }

</bundles_post_ra>
